<compile_context>
chip_gen: v7x
topology: tpu7x:2x2x1
jax: 0.10.0
libtpu: 0.0.40
codegen_flags: <defaults>
</compile_context>

<pallas_src>
import functools
import math

import numpy as np
import jax
import jax.numpy as jnp
from jax.experimental import pallas as pl
from jax.experimental.pallas import tpu as pltpu

MIN_NORM = 1e-15
_LANES = 128
_MAX_BLOCK_ROWS = 8192        # generous cap; byte budget is the real limiter
_MAX_PACK_WIDTH = 512         # largest packed lane width we will build


def _round_up(v, m):
    return ((v + m - 1) // m) * m


def _tpu_params():
    """Best-effort (trace-time) hardware query; safe fallbacks if unavailable."""
    vmem_bytes = 64 * 1024 * 1024   # conservative: v7x per-TC VMEM
    num_tc = 1
    try:
        info = pltpu.get_tpu_info()
        v = getattr(info, "vmem_capacity_bytes", None)
        if isinstance(v, int) and v > 0:
            vmem_bytes = v
        for attr in ("num_cores", "core_count", "num_tensorcores",
                     "tensorcore_count"):
            n = getattr(info, attr, None)
            if isinstance(n, int) and n > 0:
                num_tc = n
                break
    except Exception:
        pass
    return vmem_bytes, num_tc


def _mobius_finish(x, y, x2, y2, xy, c, o_ref):
    """Shared Mobius-add epilogue. x2/y2/xy broadcast against x/y."""
    u = 1.0 + (2.0 * c) * xy          # 2*c folds at trace time (c is Python float)
    cx2 = c * x2
    cy2 = c * y2
    num = (u + cy2) * x + (1.0 - cx2) * y
    denom = jnp.maximum(u + cx2 * cy2, MIN_NORM)
    inv = pl.reciprocal(denom, approx=True)   # EUP slot (otherwise idle)
    inv = inv * (2.0 - denom * inv)           # one Newton step -> ~f32 accuracy
    o_ref[...] = (num * inv).astype(o_ref.dtype)


def _mobius_add_kernel(x_ref, y_ref, o_ref, *, c):
    """Unpacked layout: full-width reduction over the last axis."""
    x = x_ref[...].astype(jnp.float32)
    y = y_ref[...].astype(jnp.float32)
    x2 = jnp.sum(x * x, axis=-1, keepdims=True)
    y2 = jnp.sum(y * y, axis=-1, keepdims=True)
    xy = jnp.sum(x * y, axis=-1, keepdims=True)
    _mobius_finish(x, y, x2, y2, xy, c, o_ref)


def _mobius_add_packed_kernel(x_ref, y_ref, seg_ref, o_ref, *, c):
    """Lane-packed layout: each 128-lane-multiple row holds W//D feature
    vectors. Segmented sums (broadcast back within each segment) are computed
    with one f32 MXU matmul per quantity against the resident block-diagonal
    0/1 matrix `seg` (hoisted out of the kernel; DMA'd once)."""
    x = x_ref[...].astype(jnp.float32)
    y = y_ref[...].astype(jnp.float32)
    seg = seg_ref[...]
    x2 = jnp.dot(x * x, seg, preferred_element_type=jnp.float32)
    y2 = jnp.dot(y * y, seg, preferred_element_type=jnp.float32)
    xy = jnp.dot(x * y, seg, preferred_element_type=jnp.float32)
    _mobius_finish(x, y, x2, y2, xy, c, o_ref)


@functools.partial(jax.jit, static_argnames=("c", "block_rows"))
def hyp_residual(x, y, c=1.0, block_rows=None):
    """HypResidual.forward(x, y) == manifold.mobius_add(x, y) on the Poincare ball."""
    assert x.shape == y.shape, (x.shape, y.shape)
    orig_shape = x.shape
    D = orig_shape[-1]
    c = float(c)

    xf = x.reshape(-1, D)              # metadata-only reshape
    yf = y.reshape(-1, D)
    n_rows = xf.shape[0]

    # ---- Lane packing -----------------------------------------------------
    # For D < 128, pack pack = lcm(D,128)//D feature vectors per lane-dense row
    # so loads/stores are unmasked full-lane ops.
    pack, W = 1, D
    if 0 < D < _LANES:
        lcm = (D * _LANES) // math.gcd(D, _LANES)
        if lcm <= _MAX_PACK_WIDTH:
            pack, W = lcm // D, lcm
    # TODO(synk): D < 128 with lcm(D,128) > _MAX_PACK_WIDTH (e.g. prime D), and
    # D >= 128 not a multiple of 128, fall back to masked partial-lane stores.

    padded = False
    if pack > 1:
        rem = n_rows % pack
        if rem:
            padded = True
            xf = jnp.pad(xf, ((0, pack - rem), (0, 0)))   # zeros -> out rows 0, sliced off
            yf = jnp.pad(yf, ((0, pack - rem), (0, 0)))
        xr = xf.reshape(-1, W)
        yr = yf.reshape(-1, W)
    else:
        xr, yr = xf, yf
    R = xr.shape[0]

    # ---- Block-size derivation (HBM-bound: biggest tile the budget allows) --
    itemsize = jnp.dtype(x.dtype).itemsize
    sub = 8 * max(1, 4 // itemsize)   # sublane packing: 8 f32 / 16 bf16 / 32 int8
    vmem_bytes, num_tc = _tpu_params()
    if vmem_bytes >= 96 * 1024 * 1024:          # v5e / v6e (128 MiB VMEM)
        tile_budget = 24 * 1024 * 1024
        vmem_limit = 64 * 1024 * 1024
    else:                                       # v7x (64 MiB per TC)
        tile_budget = 12 * 1024 * 1024
        vmem_limit = 48 * 1024 * 1024

    if block_rows is None:
        # Per row: double-buffered x/y/out tiles (6*W*itemsize) plus the f32
        # upcast temporaries the kernel materializes (~6 f32 row-vectors).
        bytes_per_row = 6 * W * itemsize + 6 * W * 4
        vmem_rows = max(sub, (tile_budget // bytes_per_row) // sub * sub)
        block_rows = min(_MAX_BLOCK_ROWS, vmem_rows)
        if block_rows >= R:
            if num_tc >= 2 and R > 2 * sub:
                # Split into near-equal blocks so the multi-TC megacore balances.
                block_rows = max(sub, _round_up(pl.cdiv(R, num_tc), sub))
            else:
                block_rows = R          # single full-extent block (always legal)

    grid = (pl.cdiv(R, block_rows),)
    params = pltpu.CompilerParams(
        dimension_semantics=("parallel",),
        vmem_limit_bytes=vmem_limit,
    )

    if pack > 1:
        ids = np.arange(W) // D
        seg = jnp.asarray((ids[:, None] == ids[None, :]).astype(np.float32))
        out = pl.pallas_call(
            functools.partial(_mobius_add_packed_kernel, c=c),
            out_shape=jax.ShapeDtypeStruct((R, W), x.dtype),
            grid=grid,
            in_specs=[
                pl.BlockSpec((block_rows, W), lambda i: (i, 0)),
                pl.BlockSpec((block_rows, W), lambda i: (i, 0)),
                pl.BlockSpec((W, W), lambda i: (0, 0)),   # resident: DMA'd once
            ],
            out_specs=pl.BlockSpec((block_rows, W), lambda i: (i, 0)),
            compiler_params=params,
        )(xr, yr, seg)
        out = out.reshape(-1, D)
        if padded:
            out = out[:n_rows]
    else:
        out = pl.pallas_call(
            functools.partial(_mobius_add_kernel, c=c),
            out_shape=jax.ShapeDtypeStruct((R, W), x.dtype),
            grid=grid,
            in_specs=[
                pl.BlockSpec((block_rows, W), lambda i: (i, 0)),
                pl.BlockSpec((block_rows, W), lambda i: (i, 0)),
            ],
            out_specs=pl.BlockSpec((block_rows, W), lambda i: (i, 0)),
            compiler_params=params,
        )(xr, yr)

    return out.reshape(orig_shape)


def _mobius_add_ref(x, y, c):
    x = x.astype(jnp.float32)
    y = y.astype(jnp.float32)
    x2 = jnp.sum(x * x, axis=-1, keepdims=True)
    y2 = jnp.sum(y * y, axis=-1, keepdims=True)
    xy = jnp.sum(x * y, axis=-1, keepdims=True)
    num = (1.0 + 2.0 * c * xy + c * y2) * x + (1.0 - c * x2) * y
    denom = 1.0 + 2.0 * c * xy + (c * c) * x2 * y2
    return num / jnp.maximum(denom, MIN_NORM)


if __name__ == "__main__":
    key = jax.random.PRNGKey(0)
    c = 1.0   # manifold curvature (HypResidual has no learnable params)

    def sample_ball(k, shape):
        # Points strictly inside the Poincare ball of curvature c.
        v = jax.random.normal(k, shape, dtype=jnp.float32)
        norm = jnp.linalg.norm(v, axis=-1, keepdims=True)
        return 0.3 * v / jnp.maximum(norm, 1e-6)

    # Case 1: 8 points on a 32-dim ball (D divides 128 -> pack=4).
    kx, ky, kx2, ky2 = jax.random.split(key, 4)
    x1 = sample_ball(kx, (8, 32))
    y1 = sample_ball(ky, (8, 32))
    out1 = jax.block_until_ready(hyp_residual(x1, y1, c=c))
    ref1 = _mobius_add_ref(x1, y1, c)
    assert out1.shape == x1.shape
    err1 = float(jnp.max(jnp.abs(out1 - ref1)))
    assert err1 < 5e-4, f"case1 max abs err {err1}"

    # Case 2: (2, 4, 48) -> D=48 does not divide 128; packs via lcm(48,128)=384.
    x2 = sample_ball(kx2, (2, 4, 48))
    y2 = sample_ball(ky2, (2, 4, 48))
    out2 = jax.block_until_ready(hyp_residual(x2, y2, c=c))
    ref2 = _mobius_add_ref(x2, y2, c)
    assert out2.shape == x2.shape
    err2 = float(jnp.max(jnp.abs(out2 - ref2)))
    assert err2 < 5e-4, f"case2 max abs err {err2}"

    print("KERNEL_OK")
</pallas_src>

<mosaic_0001>
module attributes {stable_mosaic.version = 11 : i64} {
  func.func @_mobius_add_packed_kernel(%arg0: i32, %arg1: memref<2x128xf32, #tpu.memory_space<vmem>>, %arg2: memref<2x128xf32, #tpu.memory_space<vmem>>, %arg3: memref<128x128xf32, #tpu.memory_space<vmem>>, %arg4: memref<2x128xf32, #tpu.memory_space<vmem>>) attributes {dimension_semantics = [#tpu.dimension_semantics<parallel>], iteration_bounds = array<i64: 1>, scalar_prefetch = 0 : i64, scratch_operands = 0 : i64, tpu.core_type = #tpu.core_type<tc>, window_params = [{transform_indices = @transform_0, window_bounds = array<i64: 2, 128>}, {transform_indices = @transform_1, window_bounds = array<i64: 2, 128>}, {pipeline_mode = #tpu.pipeline_mode<synchronous>, transform_indices = @transform_2, window_bounds = array<i64: 128, 128>}, {transform_indices = @transform_3, window_bounds = array<i64: 2, 128>}]} {
    %c0 = arith.constant 0 : index
    %c0_0 = arith.constant 0 : index
    %0 = vector.load %arg1[%c0, %c0_0] : memref<2x128xf32, #tpu.memory_space<vmem>>, vector<2x128xf32>
    %c0_1 = arith.constant 0 : index
    %c0_2 = arith.constant 0 : index
    %1 = vector.load %arg2[%c0_1, %c0_2] : memref<2x128xf32, #tpu.memory_space<vmem>>, vector<2x128xf32>
    %c0_3 = arith.constant 0 : index
    %c0_4 = arith.constant 0 : index
    %2 = vector.load %arg3[%c0_3, %c0_4] : memref<128x128xf32, #tpu.memory_space<vmem>>, vector<128x128xf32>
    %3 = arith.mulf %0, %0 : vector<2x128xf32>
    %cst = arith.constant dense<0.000000e+00> : vector<2x128xf32>
    %4 = tpu.matmul %3, %2, %cst {dimension_numbers = #tpu.dot_dimension_numbers<[1], [0], [0], [1], [0, 0, 1, 1], [], []>} : vector<2x128xf32>, vector<128x128xf32>, vector<2x128xf32> -> vector<2x128xf32>
    %5 = arith.mulf %1, %1 : vector<2x128xf32>
    %cst_5 = arith.constant dense<0.000000e+00> : vector<2x128xf32>
    %6 = tpu.matmul %5, %2, %cst_5 {dimension_numbers = #tpu.dot_dimension_numbers<[1], [0], [0], [1], [0, 0, 1, 1], [], []>} : vector<2x128xf32>, vector<128x128xf32>, vector<2x128xf32> -> vector<2x128xf32>
    %7 = arith.mulf %0, %1 : vector<2x128xf32>
    %cst_6 = arith.constant dense<0.000000e+00> : vector<2x128xf32>
    %8 = tpu.matmul %7, %2, %cst_6 {dimension_numbers = #tpu.dot_dimension_numbers<[1], [0], [0], [1], [0, 0, 1, 1], [], []>} : vector<2x128xf32>, vector<128x128xf32>, vector<2x128xf32> -> vector<2x128xf32>
    %cst_7 = arith.constant 2.000000e+00 : f32
    %9 = vector.broadcast %cst_7 : f32 to vector<2x128xf32>
    %10 = arith.mulf %9, %8 : vector<2x128xf32>
    %cst_8 = arith.constant 1.000000e+00 : f32
    %11 = vector.broadcast %cst_8 : f32 to vector<2x128xf32>
    %12 = arith.addf %11, %10 : vector<2x128xf32>
    %cst_9 = arith.constant 1.000000e+00 : f32
    %13 = vector.broadcast %cst_9 : f32 to vector<2x128xf32>
    %14 = arith.mulf %13, %4 : vector<2x128xf32>
    %cst_10 = arith.constant 1.000000e+00 : f32
    %15 = vector.broadcast %cst_10 : f32 to vector<2x128xf32>
    %16 = arith.mulf %15, %6 : vector<2x128xf32>
    %17 = arith.addf %12, %16 : vector<2x128xf32>
    %18 = arith.mulf %17, %0 : vector<2x128xf32>
    %cst_11 = arith.constant 1.000000e+00 : f32
    %19 = vector.broadcast %cst_11 : f32 to vector<2x128xf32>
    %20 = arith.subf %19, %14 : vector<2x128xf32>
    %21 = arith.mulf %20, %1 : vector<2x128xf32>
    %22 = arith.addf %18, %21 : vector<2x128xf32>
    %23 = arith.mulf %14, %16 : vector<2x128xf32>
    %24 = arith.addf %12, %23 : vector<2x128xf32>
    %cst_12 = arith.constant 1.000000e-15 : f32
    %25 = vector.broadcast %cst_12 : f32 to vector<2x128xf32>
    %26 = arith.maximumf %24, %25 : vector<2x128xf32>
    %27 = tpu.reciprocal %26 {approx = true} : vector<2x128xf32> -> vector<2x128xf32>
    %28 = arith.mulf %26, %27 : vector<2x128xf32>
    %cst_13 = arith.constant 2.000000e+00 : f32
    %29 = vector.broadcast %cst_13 : f32 to vector<2x128xf32>
    %30 = arith.subf %29, %28 : vector<2x128xf32>
    %31 = arith.mulf %27, %30 : vector<2x128xf32>
    %32 = arith.mulf %22, %31 : vector<2x128xf32>
    %c0_14 = arith.constant 0 : index
    %c0_15 = arith.constant 0 : index
    %33 = vector.load %arg4[%c0_14, %c0_15] : memref<2x128xf32, #tpu.memory_space<vmem>>, vector<2x128xf32>
    tpu.vector_store %arg4[%c0_14, %c0_15], %32 {strides = array<i32>} : memref<2x128xf32, #tpu.memory_space<vmem>>, vector<2x128xf32>,
    return
  }
  func.func @transform_0(%arg0: i32) -> (i32, i32) {
    %c0_i32 = arith.constant 0 : i32
    %c0_i32_0 = arith.constant 0 : i32
    return %arg0, %c0_i32 : i32, i32
  }
  func.func @transform_1(%arg0: i32) -> (i32, i32) {
    %c0_i32 = arith.constant 0 : i32
    %c0_i32_0 = arith.constant 0 : i32
    return %arg0, %c0_i32 : i32, i32
  }
  func.func @transform_2(%arg0: i32) -> (i32, i32) {
    %c0_i32 = arith.constant 0 : i32
    %c0_i32_0 = arith.constant 0 : i32
    %c0_i32_1 = arith.constant 0 : i32
    return %c0_i32, %c0_i32_0 : i32, i32
  }
  func.func @transform_3(%arg0: i32) -> (i32, i32) {
    %c0_i32 = arith.constant 0 : i32
    %c0_i32_0 = arith.constant 0 : i32
    return %arg0, %c0_i32 : i32, i32
  }
}

</mosaic_0001>

<bundles_post_ra>
// kernel: hyp_residual.1
= control target key start
LH: loop header
LB: loop body
LE: loop exit
PB: predicated region body
PF: predicated region fallthrough
CT: control target
= control target key end

     0   :  { %8 = vsyncpa [#allocation3], 0  ;;  %s540_s12 = smov [#allocation2]   ;;  %s617_s0 = inlined_call_operand.vmem [shape: f32[2,128], index: 0, kind: input, shape index: {}]   ;;  %s618_s1 = inlined_call_operand.vmem [shape: f32[2,128], index: 1, kind: input, shape index: {}]   ;;  %s619_s2 = inlined_call_operand.hbm [shape: f32[128,128], index: 2, kind: input, shape index: {}]   ;;  %s620_s3 = inlined_call_operand.vmem [shape: f32[2,128], index: 3, kind: output, shape index: {}]  }
   0x1   :  { %s18_s13 = sshll.u32 %s540_s12, 4  ;;  %s516_s16 = scalar_lea.hbm %s619_s2, 2048  ;;  %s19_s13 = int_to_ptr.vmem [resolvable:$true] %s18_s13 }
   0x2   :  { %p517_p0 = scmp.ne.s32.totalorder %s619_s2, %s516_s16  ;;  %p520_p1 = scmp.lt.u32.totalorder %s516_s16, %s619_s2 }
   0x4   :  { %p522_p2 = pnand %p520_p1, %p517_p0 }
   0x6   :  { %525 = shalt.err (!%p522_p2)
}
   0x7   :  { %s526_s21 = scalar_lea.vmem %s19_s13, 2048  ;;  %p531_p4 = scmp.lt.s32.totalorder %s19_s13, %s19_s13 }
   0x8   :  { %p527_p3 = scmp.ne.s32.totalorder %s19_s13, %s526_s21  ;;  %p532_p5 = scmp.lt.s32.totalorder %s526_s21, %s526_s21 }
   0xa   :  { %p533_p6 = por %p532_p5, %p531_p4 }
   0xc   :  { %p534_p7 = pnand %p533_p6, %p527_p3 }
   0xe   :  { %537 = shalt.err (!%p534_p7)
}
   0xf   :  { %s541_s22 = smov 128   ;;  %s542_s23 = smov 8  }
  0x10   :  { %24 = dma.hbm_to_vmem [thread:$0]  %s619_s2, 2048, %s19_s13, [#allocation3], %s541_s22, %s541_s22, %s542_s23  }
  0x11   :  { %538 = dma.done.wait [#allocation3], 2048  }
  0x12   :  { %539 = vsyncadd [#allocation3], 4294965248  ;;  %v543_v0 = vmov 0.0|0.0   ;;  %vm544_vm0 = vmmov 0   ;;  %v545_v1 = vmov 0.0   ;;  %v30_v2 = vld [vmem:[#allocation2] sm:$0xff] }
  0x13   :  { %436 = vmatprep.subr.bf16.mxu0 %v543_v0  ;;  %460 = vmatprep.subr.bf16.mxu1 %v543_v0  ;;  %v31_v3 = vld [vmem:[#allocation2 + $0x8] sm:$0xff]  ;;  %v32_v4 = vld [vmem:[#allocation2 + $0x10] sm:$0xff]  ;;  %v33_v6 = vld [vmem:[#allocation2 + $0x18] sm:$0xff] }
  0x14   :  { %363 = vmatprep.mubr.msk.f32.mxu0 %vm544_vm0, %v545_v1  ;;  %398 = vmatprep.mubr.msk.f32.mxu1 %vm544_vm0, %v545_v1  ;;  %v437_v5 = vpack.c.bf16 %v31_v3, %v30_v2  ;;  %v440_v7 = vpack.c.bf16 %v33_v6, %v32_v4  ;;  %v34_v8 = vld [vmem:[#allocation2 + $0x20] sm:$0xff]  ;;  %v35_v9 = vld [vmem:[#allocation2 + $0x28] sm:$0xff]  ;;  %v36_v11 = vld [vmem:[#allocation2 + $0x30] sm:$0xff] }
  0x15   :  { %v443_v10 = vpack.c.bf16 %v35_v9, %v34_v8  ;;  %v37_v12 = vld [vmem:[#allocation2 + $0x38] sm:$0xff]  ;;  %v38_v14 = vld [vmem:[#allocation2 + $0x40] sm:$0xff]  ;;  %v39_v15 = vld [vmem:[#allocation2 + $0x48] sm:$0xff] }
  0x16   :  { %438 = vmatpush3.bf16.msra.mxu0 %v437_v5  ;;  %462 = vmatpush3.bf16.msra.mxu1 %v437_v5  ;;  %v446_v13 = vpack.c.bf16 %v37_v12, %v36_v11  ;;  %v449_v16 = vpack.c.bf16 %v39_v15, %v38_v14  ;;  %v40_v17 = vld [vmem:[#allocation2 + $0x50] sm:$0xff]  ;;  %v41_v18 = vld [vmem:[#allocation2 + $0x58] sm:$0xff]  ;;  %v42_v20 = vld [vmem:[#allocation2 + $0x60] sm:$0xff] }
  0x17   :  { %439 = vmatprep.subr.bf16.mxu0 %v543_v0  ;;  %463 = vmatprep.subr.bf16.mxu1 %v543_v0  ;;  %v452_v19 = vpack.c.bf16 %v41_v18, %v40_v17  ;;  %v43_v21 = vld [vmem:[#allocation2 + $0x68] sm:$0xff]  ;;  %v44_v23 = vld [vmem:[#allocation2 + $0x70] sm:$0xff]  ;;  %v45_v24 = vld [vmem:[#allocation2 + $0x78] sm:$0xff] }
  0x18   :  { %v455_v22 = vpack.c.bf16 %v43_v21, %v42_v20  ;;  %v458_v25 = vpack.c.bf16 %v45_v24, %v44_v23  ;;  %v28_v26 = vld [vmem:[%s617_s0] sm:$0x3] }
  0x19   :  { %v29_v27 = vld [vmem:[%s618_s1] sm:$0x3]  ;;  %v46_v28 = vmul.f32 %v28_v26, %v28_v26 }
  0x1a   :  { %441 = vmatpush3.bf16.msra.mxu0 %v440_v7  ;;  %465 = vmatpush3.bf16.msra.mxu1 %v440_v7  ;;  %v117_v29 = vmul.f32 %v29_v27, %v29_v27  ;;  %v188_v30 = vmul.f32 %v29_v27, %v28_v26 }
  0x1b   :  { %442 = vmatprep.subr.bf16.mxu0 %v543_v0  ;;  %466 = vmatprep.subr.bf16.mxu1 %v543_v0 }
  0x1e   :  { %444 = vmatpush3.bf16.msra.mxu0 %v443_v10  ;;  %468 = vmatpush3.bf16.msra.mxu1 %v443_v10 }
  0x1f   :  { %445 = vmatprep.subr.bf16.mxu0 %v543_v0  ;;  %469 = vmatprep.subr.bf16.mxu1 %v543_v0 }
  0x22   :  { %447 = vmatpush3.bf16.msra.mxu0 %v446_v13  ;;  %471 = vmatpush3.bf16.msra.mxu1 %v446_v13 }
  0x23   :  { %448 = vmatprep.subr.bf16.mxu0 %v543_v0  ;;  %472 = vmatprep.subr.bf16.mxu1 %v543_v0 }
  0x26   :  { %450 = vmatpush3.bf16.msra.mxu0 %v449_v16  ;;  %474 = vmatpush3.bf16.msra.mxu1 %v449_v16 }
  0x27   :  { %451 = vmatprep.subr.bf16.mxu0 %v543_v0  ;;  %475 = vmatprep.subr.bf16.mxu1 %v543_v0 }
  0x2a   :  { %453 = vmatpush3.bf16.msra.mxu0 %v452_v19  ;;  %477 = vmatpush3.bf16.msra.mxu1 %v452_v19 }
  0x2b   :  { %454 = vmatprep.subr.bf16.mxu0 %v543_v0  ;;  %478 = vmatprep.subr.bf16.mxu1 %v543_v0 }
  0x2e   :  { %456 = vmatpush3.bf16.msra.mxu0 %v455_v22  ;;  %480 = vmatpush3.bf16.msra.mxu1 %v455_v22 }
  0x2f   :  { %457 = vmatprep.subr.bf16.mxu0 %v543_v0  ;;  %481 = vmatprep.subr.bf16.mxu1 %v543_v0 }
  0x32   :  { %459 = vmatpush3.bf16.msra.mxu0 %v458_v25  ;;  %483 = vmatpush3.bf16.msra.mxu1 %v458_v25 }
  0x33   :  { %484 = vmatprep.subr.bf16.mxu0 %v543_v0 }
  0x35   :  { %364 = vmatmul.mubr.f32.vlgmr.msra.gmra.mrb[0].mxu0 %v46_v28  ;;  %399 = vmatmul.mubr.f32.vlgmr.msra.gmra.mrb[0].mxu1 %v117_v29 }
  0x36   :  { %486 = vmatpush3.bf16.msra.mxu0 %v437_v5  ;;  %433 = vmatprep.mubr.msk.f32.mxu0 %vm544_vm0, %v545_v1 }
  0x37   :  { %487 = vmatprep.subr.bf16.mxu0 %v543_v0 }
  0x3a   :  { %489 = vmatpush3.bf16.msra.mxu0 %v440_v7 }
  0x3b   :  { %490 = vmatprep.subr.bf16.mxu0 %v543_v0 }
  0x3e   :  { %492 = vmatpush3.bf16.msra.mxu0 %v443_v10 }
  0x3f   :  { %493 = vmatprep.subr.bf16.mxu0 %v543_v0 }
  0x42   :  { %495 = vmatpush3.bf16.msra.mxu0 %v446_v13 }
  0x43   :  { %496 = vmatprep.subr.bf16.mxu0 %v543_v0 }
  0x46   :  { %498 = vmatpush3.bf16.msra.mxu0 %v449_v16 }
  0x47   :  { %499 = vmatprep.subr.bf16.mxu0 %v543_v0 }
  0x4a   :  { %501 = vmatpush3.bf16.msra.mxu0 %v452_v19 }
  0x4b   :  { %502 = vmatprep.subr.bf16.mxu0 %v543_v0 }
  0x4e   :  { %504 = vmatpush3.bf16.msra.mxu0 %v455_v22 }
  0x4f   :  { %505 = vmatprep.subr.bf16.mxu0 %v543_v0 }
  0x52   :  { %507 = vmatpush3.bf16.msra.mxu0 %v458_v25 }
  0x55   :  { %434 = vmatmul.mubr.f32.vlgmr.msra.gmra.mrb[2].mxu0 %v188_v30 }
 0x108   :  { %v113_v31 = vpop.f32.mrb[0].mxu0  ;;  %v184_v32 = vpop.f32.mrb[0].mxu1 }
 0x109   :  { %v365_v33 = vpop.f32.mrb[1].mxu0  ;;  %v266_v34 = vmul.f32 %v184_v32, %v113_v31  ;;  %v400_v35 = vpop.f32.mrb[1].mxu1  ;;  %v263_v39 = vsub.f32 1.0, %v113_v31 }
 0x10b   :  { %v264_v43 = vmul.f32 %v263_v39, %v29_v27 }
 0x128   :  { %v255_v36 = vpop.f32.mrb[2].mxu0 }
 0x129   :  { %v259_v37 = vmul.f32 2.0, %v255_v36  ;;  %v435_v38 = vpop.f32.mrb[3].mxu0 }
 0x12b   :  { %v260_v40 = vadd.f32 1.0, %v259_v37 }
 0x12d   :  { %v261_v41 = vadd.f32 %v260_v40, %v184_v32  ;;  %v267_v42 = vadd.f32 %v266_v34, %v260_v40 }
 0x12f   :  { %v262_v44 = vmul.f32 %v261_v41, %v28_v26  ;;  %v268_v45 = vmax.f32 %v267_v42, 1e-15 }
 0x131   :  { %v265_v46 = vadd.f32 %v264_v43, %v262_v44  ;;  %514 = vrcp.f32 %v268_v45 }
 0x13b   :  { %v515_v47 = vpop.eup %514 }
 0x13c   :  { %v270_v48 = vmul.f32 %v515_v47, %v268_v45 }
 0x13e   :  { %v271_v49 = vsub.f32 2.0, %v270_v48 }
 0x140   :  { %v272_v50 = vmul.f32 %v515_v47, %v271_v49 }
 0x142   :  { %v273_v51 = vmul.f32 %v272_v50, %v265_v46 }
 0x144   :  { %274 = vst [vmem:[%s620_s3] sm:$0x3] %v273_v51 }
 0x145   :  { %279 = vsyncpa [#allocation3], 1 }

</bundles_post_ra>
